<compile_context>
chip_gen: v5e
topology: v5e:2x2
jax: 0.10.0
libtpu: 0.0.40
codegen_flags: <defaults>
</compile_context>

<pallas_src>
import functools

import jax
import jax.numpy as jnp
from jax import lax
from jax.experimental import pallas as pl
from jax.experimental.pallas import tpu as pltpu  # noqa: F401


def _msa_kernel(x_ref, wqkv_ref, bqkv_ref, emask_ref, vmask_ref, o_ref, *,
                n_heads, dim):
    """Whole-batch MSA in one kernel invocation.

    x_ref     : (B*S, dim)      flattened input
    wqkv_ref  : (dim, 3*dim)    block-diag Wq|Wk|Wv (Wq pre-scaled by 1/sqrt(D))
    bqkv_ref  : (1, 3*dim)      bq|bk|bv (bq pre-scaled)
    emask_ref : (B*S, H*B*S)    0/1 same-batch mask applied to exp(scores)
    vmask_ref : (H*B*S, dim)    0/1 head-block mask (also the denominator matmul)
    o_ref     : (B*S, dim)
    """
    x = x_ref[...]

    # Single fused QKV projection (one MXU push instead of three).
    qkv = (jnp.dot(x, wqkv_ref[...], preferred_element_type=jnp.float32)
           + bqkv_ref[...])
    q = qkv[:, :dim]              # already scaled by 1/sqrt(d_head)
    k = qkv[:, dim:2 * dim]
    v = qkv[:, 2 * dim:]

    vmask = vmask_ref[...]
    # Head-stacked, head-masked K and V: row j encodes (head h = j // (B*S),
    # global position m = j % (B*S)); only head-h feature lanes survive.
    k_big = jnp.concatenate([k] * n_heads, axis=0) * vmask      # (H*B*S, dim)
    v_big = jnp.concatenate([v] * n_heads, axis=0) * vmask      # (H*B*S, dim)

    # scores[r, h*(B*S) + m] = q_h(r) . k_h(m)
    scores = lax.dot_general(q, k_big, (((1,), (1,)), ((), ())),
                             preferred_element_type=jnp.float32)  # (B*S, H*B*S)
    # Per-row constant subtraction keeps softmax exact while bounding exp <= 1.
    scores = scores - jnp.max(scores, axis=-1, keepdims=True)
    e = jnp.exp(scores) * emask_ref[...]      # exact zeros for cross-batch cols

    # Numerator and per-head broadcast denominator, each one MXU matmul.
    num = jnp.dot(e, v_big, preferred_element_type=jnp.float32)  # (B*S, dim)
    den = jnp.dot(e, vmask, preferred_element_type=jnp.float32)  # (B*S, dim)
    o_ref[...] = (num / den).astype(o_ref.dtype)


def pack_msa_params(wq, bq, wk, bk, wv, bv, batch, seq):
    """One-time packing of per-head weights + masks (hoisted off the call path)."""
    H, D, _ = wq.shape
    dim = H * D
    scale = 1.0 / (float(D) ** 0.5)

    wq_bd = jax.scipy.linalg.block_diag(*wq) * scale
    wk_bd = jax.scipy.linalg.block_diag(*wk)
    wv_bd = jax.scipy.linalg.block_diag(*wv)
    wqkv = jnp.concatenate([wq_bd, wk_bd, wv_bd], axis=1).astype(jnp.float32)
    bqkv = jnp.concatenate(
        [bq.reshape(-1) * scale, bk.reshape(-1), bv.reshape(-1)]
    ).reshape(1, 3 * dim).astype(jnp.float32)

    bs = batch * seq
    head_of_j = jnp.arange(H * bs) // bs            # head id of stacked row j
    head_of_c = jnp.arange(dim) // D                # head id of feature column c
    vmask = (head_of_j[:, None] == head_of_c[None, :]).astype(jnp.float32)

    batch_of_r = jnp.arange(bs) // seq              # batch id of query row r
    batch_of_j = (jnp.arange(H * bs) % bs) // seq   # batch id of key column j
    emask = (batch_of_r[:, None] == batch_of_j[None, :]).astype(jnp.float32)

    return dict(wqkv=wqkv, bqkv=bqkv, emask=emask, vmask=vmask,
                n_heads=H, d_head=D, dim=dim, batch=batch, seq=seq)


def msa_forward(x, params):
    """x: (B, S, dim); params: output of pack_msa_params."""
    B, S, dim = x.shape
    assert dim == params["dim"] and B == params["batch"] and S == params["seq"]
    x_flat = x.reshape(B * S, dim)     # free wrapper-side metadata reshape

    kernel = functools.partial(_msa_kernel, n_heads=params["n_heads"], dim=dim)
    out_flat = pl.pallas_call(
        kernel,
        out_shape=jax.ShapeDtypeStruct((B * S, dim), x.dtype),
    )(x_flat, params["wqkv"], params["bqkv"], params["emask"], params["vmask"])
    return out_flat.reshape(B, S, dim)


def msa_reference(x, wq, bq, wk, bk, wv, bv):
    """Pure-JAX reference mirroring the PyTorch loop semantics."""
    B, S, dim = x.shape
    H, D, _ = wq.shape
    scale = 1.0 / (float(D) ** 0.5)
    outs = []
    for b in range(B):
        heads = []
        for h in range(H):
            seq = x[b, :, h * D:(h + 1) * D]
            q = seq @ wq[h] + bq[h]
            k = seq @ wk[h] + bk[h]
            v = seq @ wv[h] + bv[h]
            attn = jax.nn.softmax(q @ k.T * scale, axis=-1)
            heads.append(attn @ v)
        outs.append(jnp.concatenate(heads, axis=-1))
    return jnp.stack(outs, axis=0)


if __name__ == "__main__":
    B, S = 2, 8
    dim, n_heads = 32, 8
    d_head = dim // n_heads

    key = jax.random.PRNGKey(0)
    kx, kwq, kbq, kwk, kbk, kwv, kbv = jax.random.split(key, 7)

    x = jax.random.normal(kx, (B, S, dim), dtype=jnp.float32)
    # Deterministic synthetic parameters (nn.Linear(d_head, d_head) per head).
    wq = jax.random.normal(kwq, (n_heads, d_head, d_head), jnp.float32) * 0.2
    wk = jax.random.normal(kwk, (n_heads, d_head, d_head), jnp.float32) * 0.2
    wv = jax.random.normal(kwv, (n_heads, d_head, d_head), jnp.float32) * 0.2
    bq = jax.random.normal(kbq, (n_heads, d_head), jnp.float32) * 0.1
    bk = jax.random.normal(kbk, (n_heads, d_head), jnp.float32) * 0.1
    bv = jax.random.normal(kbv, (n_heads, d_head), jnp.float32) * 0.1

    # One-time packing (off the per-call path).
    params = pack_msa_params(wq, bq, wk, bk, wv, bv, batch=B, seq=S)

    out = msa_forward(x, params)
    out = jax.block_until_ready(out)

    ref = msa_reference(x, wq, bq, wk, bk, wv, bv)
    assert out.shape == (B, S, dim)
    max_err = float(jnp.max(jnp.abs(out - ref)))
    # Tolerance covers MXU f32 matmul rounding; softmax division is exact.
    assert jnp.allclose(out, ref, atol=5e-3, rtol=5e-3), max_err

    print("KERNEL_OK")
</pallas_src>

<mosaic_0001>
module attributes {stable_mosaic.version = 11 : i64} {
  func.func @_msa_kernel(%arg0: memref<16x32xf32, #tpu.memory_space<vmem>>, %arg1: memref<32x96xf32, #tpu.memory_space<vmem>>, %arg2: memref<1x96xf32, #tpu.memory_space<vmem>>, %arg3: memref<16x128xf32, #tpu.memory_space<vmem>>, %arg4: memref<128x32xf32, #tpu.memory_space<vmem>>, %arg5: memref<16x32xf32, #tpu.memory_space<vmem>>) attributes {dimension_semantics = [], scalar_prefetch = 0 : i64, scratch_operands = 0 : i64, tpu.core_type = #tpu.core_type<tc>} {
    %c0 = arith.constant 0 : index
    %c0_0 = arith.constant 0 : index
    %0 = vector.load %arg0[%c0, %c0_0] : memref<16x32xf32, #tpu.memory_space<vmem>>, vector<16x32xf32>
    %c0_1 = arith.constant 0 : index
    %c0_2 = arith.constant 0 : index
    %1 = vector.load %arg1[%c0_1, %c0_2] : memref<32x96xf32, #tpu.memory_space<vmem>>, vector<32x96xf32>
    %cst = arith.constant dense<0.000000e+00> : vector<16x96xf32>
    %2 = tpu.matmul %0, %1, %cst {dimension_numbers = #tpu.dot_dimension_numbers<[1], [0], [0], [1], [0, 0, 1, 1], [], []>} : vector<16x32xf32>, vector<32x96xf32>, vector<16x96xf32> -> vector<16x96xf32>
    %c0_3 = arith.constant 0 : index
    %c0_4 = arith.constant 0 : index
    %3 = vector.load %arg2[%c0_3, %c0_4] : memref<1x96xf32, #tpu.memory_space<vmem>>, vector<1x96xf32>
    %4 = vector.broadcast %3 : vector<1x96xf32> to vector<16x96xf32>
    %5 = arith.addf %2, %4 : vector<16x96xf32>
    %6 = vector.extract_strided_slice %5 {offsets = [0, 0], sizes = [16, 32], strides = [1, 1]} : vector<16x96xf32> to vector<16x32xf32>
    %7 = vector.extract_strided_slice %5 {offsets = [0, 32], sizes = [16, 32], strides = [1, 1]} : vector<16x96xf32> to vector<16x32xf32>
    %8 = vector.extract_strided_slice %5 {offsets = [0, 64], sizes = [16, 32], strides = [1, 1]} : vector<16x96xf32> to vector<16x32xf32>
    %c0_5 = arith.constant 0 : index
    %c0_6 = arith.constant 0 : index
    %9 = vector.load %arg4[%c0_5, %c0_6] : memref<128x32xf32, #tpu.memory_space<vmem>>, vector<128x32xf32>
    %10 = tpu.concatenate %7, %7, %7, %7, %7, %7, %7, %7 in 0 : vector<16x32xf32>, vector<16x32xf32>, vector<16x32xf32>, vector<16x32xf32>, vector<16x32xf32>, vector<16x32xf32>, vector<16x32xf32>, vector<16x32xf32> -> vector<128x32xf32>
    %11 = arith.mulf %10, %9 : vector<128x32xf32>
    %12 = tpu.concatenate %8, %8, %8, %8, %8, %8, %8, %8 in 0 : vector<16x32xf32>, vector<16x32xf32>, vector<16x32xf32>, vector<16x32xf32>, vector<16x32xf32>, vector<16x32xf32>, vector<16x32xf32>, vector<16x32xf32> -> vector<128x32xf32>
    %13 = arith.mulf %12, %9 : vector<128x32xf32>
    %cst_7 = arith.constant dense<0.000000e+00> : vector<16x128xf32>
    %14 = tpu.matmul %6, %11, %cst_7 {dimension_numbers = #tpu.dot_dimension_numbers<[1], [1], [0], [0], [0, 0, 1, 0], [], []>} : vector<16x32xf32>, vector<128x32xf32>, vector<16x128xf32> -> vector<16x128xf32>
    %cst_8 = arith.constant dense<0xFF800000> : vector<16xf32>
    %15 = vector.multi_reduction <maximumf>, %14, %cst_8 [1] : vector<16x128xf32> to vector<16xf32>
    %16 = vector.shape_cast %15 : vector<16xf32> to vector<16x1xf32>
    %17 = vector.broadcast %16 : vector<16x1xf32> to vector<16x128xf32>
    %18 = arith.subf %14, %17 : vector<16x128xf32>
    %19 = math.exp %18 : vector<16x128xf32>
    %c0_9 = arith.constant 0 : index
    %c0_10 = arith.constant 0 : index
    %20 = vector.load %arg3[%c0_9, %c0_10] : memref<16x128xf32, #tpu.memory_space<vmem>>, vector<16x128xf32>
    %21 = arith.mulf %19, %20 : vector<16x128xf32>
    %cst_11 = arith.constant dense<0.000000e+00> : vector<16x32xf32>
    %22 = tpu.matmul %21, %13, %cst_11 {dimension_numbers = #tpu.dot_dimension_numbers<[1], [0], [0], [1], [0, 0, 1, 1], [], []>} : vector<16x128xf32>, vector<128x32xf32>, vector<16x32xf32> -> vector<16x32xf32>
    %cst_12 = arith.constant dense<0.000000e+00> : vector<16x32xf32>
    %23 = tpu.matmul %21, %9, %cst_12 {dimension_numbers = #tpu.dot_dimension_numbers<[1], [0], [0], [1], [0, 0, 1, 1], [], []>} : vector<16x128xf32>, vector<128x32xf32>, vector<16x32xf32> -> vector<16x32xf32>
    %24 = arith.divf %22, %23 : vector<16x32xf32>
    %c0_13 = arith.constant 0 : index
    %c0_14 = arith.constant 0 : index
    %25 = vector.load %arg5[%c0_13, %c0_14] : memref<16x32xf32, #tpu.memory_space<vmem>>, vector<16x32xf32>
    tpu.vector_store %arg5[%c0_13, %c0_14], %24 {strides = array<i32>} : memref<16x32xf32, #tpu.memory_space<vmem>>, vector<16x32xf32>,
    return
  }
}

</mosaic_0001>

<bundles_post_ra>
// kernel: tpu_custom_call.1
= control target key start
LH: loop header
LB: loop body
LE: loop exit
PB: predicated region body
PF: predicated region fallthrough
CT: control target
= control target key end

     0   :  { %s605_s24 = smov 32   ;;  %vm31_vm0 = vcmask 261120   ;;  %s915_s0 = inlined_call_operand.vmem [shape: f32[16,32], index: 0, kind: input, shape index: {}]   ;;  %s916_s1 = inlined_call_operand.vmem [shape: f32[32,96], index: 1, kind: input, shape index: {}]   ;;  %s917_s2 = inlined_call_operand.vmem [shape: f32[1,96], index: 2, kind: input, shape index: {}]   ;;  %s918_s3 = inlined_call_operand.vmem [shape: f32[16,128], index: 3, kind: input, shape index: {}]   ;;  %s919_s4 = inlined_call_operand.vmem [shape: f32[128,32], index: 4, kind: input, shape index: {}]   ;;  %s920_s5 = inlined_call_operand.hbm [shape: f32[16,32], index: 5, kind: output, shape index: {}]  }
   0x1   :  { %v644_v0 = vld [vmem:[%s919_s4 + $0x78] sm:$0xff]  ;;  %v25_v2 = vld [vmem:[%s916_s1 + $0x10] sm:$0xff]  ;;  %v657_v3 = vld [vmem:[%s919_s4 + $0x68] sm:$0xff] }
   0x2   :  { %v26_v1 = vld [vmem:[%s916_s1 + $0x18] sm:$0xff]  ;;  %123 = vrot.lane.b32.xlu0 %v644_v0, %s605_s24  ;;  %119 = vrot.lane.b32.xlu1 %v657_v3, %s605_s24  ;;  %v24_v4 = vld [vmem:[%s916_s1 + $0x8] sm:$0xff] }
   0x3   :  { %50 = vmatpush.msra.mxu0 %v26_v1  ;;  %431 = vmatpush.msra.mxu3 %v644_v0  ;;  %v668_v5 = vld [vmem:[%s919_s4 + $0x70] sm:$0xff]  ;;  %v23_v6 = vld [vmem:[%s916_s1] sm:$0xff]  ;;  %v680_v8 = vld [vmem:[%s919_s4 + $0x58] sm:$0xff] }
   0x4   :  { %v21_v7 = vld [vmem:[%s915_s0] sm:$0xff]  ;;  %115 = vrot.lane.b32.xlu2 %v680_v8, %s605_s24 }
   0x5   :  { %51 = vmatpush.msra.mxu0 %v25_v2  ;;  %432 = vmatpush.msra.mxu3 %v668_v5 }
   0x7   :  { %52 = vmatpush.msra.mxu0 %v24_v4  ;;  %433 = vmatpush.msra.mxu3 %v657_v3 }
   0x8   :  { %10 = vsyncpa [#allocation3], 0  ;;  %v688_v9 = vld [vmem:[%s919_s4 + $0x60] sm:$0xff]  ;;  %v700_v10 = vld [vmem:[%s919_s4 + $0x50] sm:$0xff]  ;;  %s606_s13 = smov 96   ;;  %s492_s19 = sshll.u32 %s920_s5, 4  ;;  %s493_s19 = int_to_ptr.hbm [resolvable:$true] %s492_s19 }
   0x9   :  { %53 = vmatpush.msra.mxu0 %v23_v6  ;;  %434 = vmatpush.msra.mxu3 %v688_v9  ;;  %v22_v11 = vld [vmem:[%s915_s0 + $0x8] sm:$0xff]  ;;  %v717_v13 = vld [vmem:[%s919_s4 + $0x40] sm:$0xff]  ;;  %v726_v14 = vld [vmem:[%s919_s4 + $0x38] sm:$0xff]  ;;  %s609_s20 = smov 128   ;;  %s610_s0 = smov 8  }
   0xa   :  { %504 = vmatmul.msk.f32.vlgmr.msra.gmra.mxu0 %vm31_vm0, %v21_v7  ;;  %121 = vrot.lane.b32.xlu0 %v668_v5, %s605_s24  ;;  %v709_v12 = vld [vmem:[%s919_s4 + $0x48] sm:$0xff]  ;;  %v734_v15 = vld [vmem:[%s919_s4 + $0x30] sm:$0xff]  ;;  %v748_v17 = vld [vmem:[%s919_s4 + $0x20] sm:$0xff] }
   0xb   :  { %117 = vrot.lane.b32.xlu1 %v688_v9, %s605_s24  ;;  %435 = vmatpush.msra.mxu3 %v680_v8  ;;  %v740_v16 = vld [vmem:[%s919_s4 + $0x28] sm:$0xff]  ;;  %v760_v18 = vld [vmem:[%s919_s4 + $0x18] sm:$0xff]  ;;  %v766_v19 = vld [vmem:[%s919_s4 + $0x10] sm:$0xff] }
   0xc   :  { %113 = vrot.lane.b32.xlu2 %v700_v10, %s605_s24  ;;  %v772_v20 = vld [vmem:[%s919_s4 + $0x8] sm:$0xff]  ;;  %v570_v22 = vld [vmem:[%s917_s2] ss:$0 sm:$0xff]  ;;  %s607_s2 = smov 64  }
   0xd   :  { %436 = vmatpush.msra.mxu3 %v700_v10  ;;  %v781_v23 = vld [vmem:[%s919_s4] sm:$0xff] }
   0xf   :  { %437 = vmatpush.msra.mxu3 %v709_v12 }
  0x11   :  { %438 = vmatpush.msra.mxu3 %v717_v13 }
  0x12   :  { %505 = vmatmul.msk.f32.gmra.mxu0 %vm31_vm0, %v22_v11  ;;  %111 = vrot.lane.b32.xlu0 %v709_v12, %s605_s24 }
  0x13   :  { %109 = vrot.lane.b32.xlu1 %v717_v13, %s605_s24  ;;  %439 = vmatpush.msra.mxu3 %v726_v14 }
  0x14   :  { %107 = vrot.lane.b32.xlu2 %v726_v14, %s605_s24 }
  0x15   :  { %440 = vmatpush.msra.mxu3 %v734_v15 }
  0x17   :  { %441 = vmatpush.msra.mxu3 %v740_v16 }
  0x19   :  { %442 = vmatpush.msra.mxu3 %v748_v17 }
  0x1a   :  { %105 = vrot.lane.b32.xlu0 %v734_v15, %s605_s24 }
  0x1b   :  { %103 = vrot.lane.b32.xlu1 %v740_v16, %s605_s24  ;;  %443 = vmatpush.msra.mxu3 %v760_v18 }
  0x1d   :  { %444 = vmatpush.msra.mxu3 %v766_v19 }
  0x1f   :  { %445 = vmatpush.msra.mxu3 %v772_v20 }
  0x21   :  { %446 = vmatpush.msra.mxu3 %v781_v23 }
  0x22   :  { %101 = vrot.lane.b32.xlu0 %v748_v17, %s605_s24 }
  0x5e   :  { %v116_v33 = vpop.permute.xlu2 %115 }
  0x66   :  { %v114_v36 = vpop.permute.xlu2 %113 }
  0x6e   :  { %v108_v42 = vpop.permute.xlu2 %107 }
  0x74   :  { %v124_v21 = vpop.permute.xlu0 %123  ;;  %v120_v30 = vpop.permute.xlu1 %119 }
  0x7c   :  { %v122_v26 = vpop.permute.xlu0 %121 }
  0x7d   :  { %v118_v37 = vpop.permute.xlu1 %117 }
  0x84   :  { %v112_v34 = vpop.permute.xlu0 %111 }
  0x85   :  { %v110_v45 = vpop.permute.xlu1 %109 }
  0x87   :  { %v55_v24 = vpop.f32.mrf.mxu0 }
  0x88   :  { %v784_v25 = vadd.f32 %v570_v22, %v55_v24 }
  0x8a   :  { %v155_v27 = vmul.f32 %v122_v26, %v784_v25  ;;  %v151_v38 = vmul.f32 %v114_v36, %v784_v25  ;;  %v153_v39 = vmul.f32 %v118_v37, %v784_v25  ;;  %v149_v47 = vmul.f32 %v110_v45, %v784_v25 }
  0x8c   :  { %265 = vrot.lane.b32.xlu1 %v155_v27, %s606_s13  ;;  %v106_v41 = vpop.permute.xlu0 %105 }
  0x8d   :  { %v147_v44 = vmul.f32 %v106_v41, %v784_v25  ;;  %v104_v49 = vpop.permute.xlu1 %103 }
  0x8f   :  { %v58_v28 = vpop.f32.mrf.mxu0 }
  0x90   :  { %v788_v29 = vadd.f32 %v570_v22, %v58_v28 }
  0x92   :  { %v156_v31 = vmul.f32 %v124_v21, %v788_v29  ;;  %v154_v32 = vmul.f32 %v120_v30, %v788_v29  ;;  %v152_v35 = vmul.f32 %v116_v33, %v788_v29  ;;  %v150_v40 = vmul.f32 %v112_v34, %v788_v29 }
  0x93   :  { %v148_v43 = vmul.f32 %v108_v42, %v788_v29  ;;  %v146_v50 = vmul.f32 %v104_v49, %v788_v29 }
  0x94   :  { %267 = vrot.lane.b32.xlu2 %v156_v31, %s606_s13  ;;  %263 = vrot.lane.b32.xlu0 %v154_v32, %s606_s13  ;;  %v102_v46 = vpop.permute.xlu0 %101 }
  0x95   :  { %97 = vrot.lane.b32.xlu1 %v766_v19, %s605_s24  ;;  %v145_v48 = vmul.f32 %v102_v46, %v784_v25 }
  0x9c   :  { %99 = vrot.lane.b32.xlu2 %v760_v18, %s605_s24  ;;  %95 = vrot.lane.b32.xlu0 %v772_v20, %s605_s24 }
  0x9d   :  { %259 = vrot.lane.b32.xlu1 %v152_v35, %s606_s13 }
  0xa4   :  { %261 = vrot.lane.b32.xlu2 %v153_v39, %s606_s13  ;;  %257 = vrot.lane.b32.xlu0 %v151_v38, %s606_s13 }
  0xa5   :  { %255 = vrot.lane.b32.xlu1 %v150_v40, %s606_s13 }
  0xac   :  { %93 = vrot.lane.b32.xlu2 %v781_v23, %s605_s24  ;;  %251 = vrot.lane.b32.xlu0 %v148_v43, %s606_s13 }
  0xad   :  { %249 = vrot.lane.b32.xlu1 %v147_v44, %s606_s13 }
  0xb4   :  { %253 = vrot.lane.b32.xlu2 %v149_v47, %s606_s13  ;;  %245 = vrot.lane.b32.xlu0 %v145_v48, %s606_s13 }
  0xbc   :  { %247 = vrot.lane.b32.xlu2 %v146_v50, %s606_s13 }
  0xee   :  { %v268_v51 = vpop.permute.xlu2 %267 }
  0xef   :  { %506 = vmatpush.xpose.msk.msra.mxu1 %vm31_vm0, %v268_v51 }
  0xf6   :  { %v100_v52 = vpop.permute.xlu2 %99 }
  0xf7   :  { %v144_v53 = vmul.f32 %v100_v52, %v788_v29 }
  0xf9   :  { %243 = vrot.lane.b32.xlu1 %v144_v53, %s606_s13 }
  0xfe   :  { %v266_v54 = vpop.permute.xlu1 %265  ;;  %v262_v55 = vpop.permute.xlu2 %261 }
  0xff   :  { %507 = vmatpush.xpose.msk.msra.mxu1 %vm31_vm0, %v266_v54 }
 0x106   :  { %v264_v56 = vpop.permute.xlu0 %263  ;;  %v94_v57 = vpop.permute.xlu2 %93 }
 0x107   :  { %v98_v58 = vpop.permute.xlu1 %97  ;;  %v141_v59 = vmul.f32 %v94_v57, %v784_v25  ;;  %508 = vmatpush.xpose.msk.msra.mxu1 %vm31_vm0, %v264_v56 }
 0x108   :  { %v143_v60 = vmul.f32 %v98_v58, %v784_v25 }
 0x109   :  { %237 = vrot.lane.b32.xlu1 %v141_v59, %s606_s13 }
 0x10a   :  { %241 = vrot.lane.b32.xlu2 %v143_v60, %s606_s13 }
 0x10b   :  { %509 = vmatpush.xpose.msk.msra.mxu1 %vm31_vm0, %v262_v55 }
 0x10e   :  { %v96_v61 = vpop.permute.xlu0 %95 }
 0x10f   :  { %v142_v62 = vmul.f32 %v96_v61, %v788_v29  ;;  %v260_v63 = vpop.permute.xlu1 %259 }
 0x110   :  { %510 = vmatpush.xpose.msk.msra.mxu1 %vm31_vm0, %v260_v63 }
 0x111   :  { %183 = vrot.lane.b32.xlu1 %v657_v3, %s607_s2  ;;  %239 = vrot.lane.b32.xlu0 %v142_v62, %s606_s13  ;;  %v254_v3 = vpop.permute.xlu2 %253 }
 0x112   :  { %187 = vrot.lane.b32.xlu2 %v644_v0, %s607_s2 }
 0x116   :  { %v258_v1 = vpop.permute.xlu0 %257 }
 0x117   :  { %511 = vmatpush.xpose.msk.msra.mxu1 %vm31_vm0, %v258_v1  ;;  %v256_v2 = vpop.permute.xlu1 %255 }
 0x119   :  { %177 = vrot.lane.b32.xlu1 %v700_v10, %s607_s2  ;;  %185 = vrot.lane.b32.xlu0 %v668_v5, %s607_s2  ;;  %v248_v5 = vpop.permute.xlu2 %247 }
 0x11a   :  { %181 = vrot.lane.b32.xlu2 %v688_v9, %s607_s2 }
 0x11b   :  { %512 = vmatpush.xpose.msk.msra.mxu1 %vm31_vm0, %v256_v2 }
 0x11e   :  { %v252_v0 = vpop.permute.xlu0 %251 }
 0x11f   :  { %513 = vmatpush.xpose.msk.msra.mxu1 %vm31_vm0, %v254_v3  ;;  %v250_v4 = vpop.permute.xlu1 %249 }
 0x121   :  { %171 = vrot.lane.b32.xlu1 %v726_v14, %s607_s2  ;;  %179 = vrot.lane.b32.xlu0 %v680_v8, %s607_s2 }
 0x122   :  { %175 = vrot.lane.b32.xlu2 %v709_v12, %s607_s2 }
 0x123   :  { %514 = vmatpush.xpose.msk.msra.mxu1 %vm31_vm0, %v252_v0 }
 0x126   :  { %v246_v6 = vpop.permute.xlu0 %245 }
 0x127   :  { %515 = vmatpush.xpose.msk.msra.mxu1 %vm31_vm0, %v250_v4 }
 0x129   :  { %165 = vrot.lane.b32.xlu1 %v748_v17, %s607_s2  ;;  %173 = vrot.lane.b32.xlu0 %v717_v13, %s607_s2 }
 0x12a   :  { %169 = vrot.lane.b32.xlu2 %v734_v15, %s607_s2 }
 0x12b   :  { %516 = vmatpush.xpose.msk.msra.mxu1 %vm31_vm0, %v248_v5 }
 0x12f   :  { %517 = vmatpush.xpose.msk.msra.mxu1 %vm31_vm0, %v246_v6 }
 0x131   :  { %159 = vrot.lane.b32.xlu1 %v772_v20, %s607_s2  ;;  %167 = vrot.lane.b32.xlu0 %v740_v16, %s607_s2 }
 0x132   :  { %163 = vrot.lane.b32.xlu2 %v760_v18, %s607_s2 }
 0x139   :  { %161 = vrot.lane.b32.xlu0 %v766_v19, %s607_s2 }
 0x13a   :  { %157 = vrot.lane.b32.xlu2 %v781_v23, %s607_s2 }
 0x164   :  { %v242_v8 = vpop.permute.xlu2 %241 }
 0x16b   :  { %v244_v7 = vpop.permute.xlu1 %243 }
 0x16c   :  { %518 = vmatpush.xpose.msk.msra.mxu1 %vm31_vm0, %v244_v7  ;;  %v188_v9 = vpop.permute.xlu2 %187 }
 0x16d   :  { %v220_v18 = vmul.f32 %v188_v9, %v788_v29 }
 0x170   :  { %519 = vmatpush.xpose.msk.msra.mxu1 %vm31_vm0, %v242_v8 }
 0x174   :  { %v182_v11 = vpop.permute.xlu2 %181 }
 0x175   :  { %v217_v14 = vmul.f32 %v182_v11, %v784_v25 }
 0x17b   :  { %v238_v10 = vpop.permute.xlu1 %237 }
 0x17c   :  { %v176_v27 = vpop.permute.xlu2 %175 }
 0x17d   :  { %v214_v30 = vmul.f32 %v176_v27, %v788_v29 }
 0x183   :  { %v184_v12 = vpop.permute.xlu1 %183  ;;  %v240_v13 = vpop.permute.xlu0 %239 }
 0x184   :  { %v218_v15 = vmul.f32 %v184_v12, %v788_v29  ;;  %520 = vmatpush.xpose.msk.msra.mxu1 %vm31_vm0, %v240_v13  ;;  %v170_v34 = vpop.permute.xlu2 %169 }
 0x185   :  { %v211_v36 = vmul.f32 %v170_v34, %v784_v25 }
 0x186   :  { %v535_v16 = vpack.i.bf16 %v217_v14, %v218_v15 }
 0x188   :  { %536 = vrot.lane.b32.xlu2 %v535_v16, %s607_s2  ;;  %521 = vmatpush.xpose.msk.msra.mxu1 %vm31_vm0, %v238_v10 }
 0x18b   :  { %522 = vmatmul.msk.f32.vlgmr.msra.gmra.mxu1 %vm31_vm0, %v784_v25  ;;  %v186_v17 = vpop.permute.xlu0 %185  ;;  %v178_v21 = vpop.permute.xlu1 %177 }
 0x18c   :  { %v219_v19 = vmul.f32 %v186_v17, %v784_v25  ;;  %v215_v23 = vmul.f32 %v178_v21, %v784_v25  ;;  %v164_v44 = vpop.permute.xlu2 %163 }
 0x18d   :  { %v208_v46 = vmul.f32 %v164_v44, %v788_v29 }
 0x18e   :  { %v530_v20 = vpack.i.bf16 %v219_v19, %v220_v18  ;;  %v341_v19 = vld [vmem:[%s918_s3 + $0x8] sm:$0xff] }
 0x190   :  { %531 = vrot.lane.b32.xlu1 %v530_v20, %s607_s2 }
 0x193   :  { %523 = vmatmul.msk.f32.gmra.mxu1 %vm31_vm0, %v788_v29  ;;  %v180_v22 = vpop.permute.xlu0 %179  ;;  %v172_v33 = vpop.permute.xlu1 %171 }
 0x194   :  { %v216_v24 = vmul.f32 %v180_v22, %v788_v29  ;;  %v212_v35 = vmul.f32 %v172_v33, %v788_v29  ;;  %v158_v48 = vpop.permute.xlu2 %157 }
 0x195   :  { %v205_v7 = vmul.f32 %v158_v48, %v784_v25 }
 0x196   :  { %v540_v26 = vpack.i.bf16 %v215_v23, %v216_v24  ;;  %v550_v38 = vpack.i.bf16 %v211_v36, %v212_v35 }
 0x198   :  { %541 = vrot.lane.b32.xlu2 %v540_v26, %s607_s2 }
 0x19b   :  { %v174_v28 = vpop.permute.xlu0 %173  ;;  %v166_v39 = vpop.permute.xlu1 %165 }
 0x19c   :  { %v213_v31 = vmul.f32 %v174_v28, %v784_v25  ;;  %v209_v41 = vmul.f32 %v166_v39, %v784_v25 }
 0x19e   :  { %v545_v32 = vpack.i.bf16 %v213_v31, %v214_v30 }
 0x1a0   :  { %546 = vrot.lane.b32.xlu2 %v545_v32, %s607_s2 }
 0x1a3   :  { %v168_v37 = vpop.permute.xlu0 %167  ;;  %v160_v51 = vpop.permute.xlu1 %159 }
 0x1a4   :  { %v210_v40 = vmul.f32 %v168_v37, %v788_v29  ;;  %v206_v4 = vmul.f32 %v160_v51, %v788_v29 }
 0x1a6   :  { %v555_v42 = vpack.i.bf16 %v209_v41, %v210_v40  ;;  %v565_v9 = vpack.i.bf16 %v205_v7, %v206_v4 }
 0x1a8   :  { %551 = vrot.lane.b32.xlu2 %v550_v38, %s607_s2 }
 0x1ab   :  { %v162_v43 = vpop.permute.xlu0 %161 }
 0x1ac   :  { %v207_v45 = vmul.f32 %v162_v43, %v784_v25  ;;  %v340_v25 = vld [vmem:[%s918_s3] sm:$0xff]  ;;  %s608_s3 = smov [#allocation2]  }
 0x1ad   :  { %s490_s16 = sshll.u32 %s608_s3, 4  ;;  %s491_s16 = int_to_ptr.vmem [resolvable:$true] %s490_s16 }
 0x1ae   :  { %v560_v47 = vpack.i.bf16 %v207_v45, %v208_v46 }
 0x1b0   :  { %556 = vrot.lane.b32.xlu2 %v555_v42, %s607_s2 }
 0x1b8   :  { %561 = vrot.lane.b32.xlu2 %v560_v47, %s607_s2 }
 0x1e2   :  { %v537_v49 = vpop.permute.xlu2 %536 }
 0x1e3   :  { %v538_v57 = vunpack.i.l.bf16 %v537_v49  ;;  %v539_v59 = vunpack.i.h.bf16 %v537_v49 }
 0x1f2   :  { %v542_v50 = vpop.permute.xlu2 %541 }
 0x1f3   :  { %v543_v60 = vunpack.i.l.bf16 %v542_v50  ;;  %v544_v61 = vunpack.i.h.bf16 %v542_v50 }
 0x1fa   :  { %v547_v52 = vpop.permute.xlu2 %546 }
 0x1fb   :  { %v548_v63 = vunpack.i.l.bf16 %v547_v52  ;;  %v549_v2 = vunpack.i.h.bf16 %v547_v52 }
 0x202   :  { %v532_v53 = vpop.permute.xlu1 %531  ;;  %v552_v55 = vpop.permute.xlu2 %551 }
 0x203   :  { %v533_v54 = vunpack.i.l.bf16 %v532_v53  ;;  %v534_v56 = vunpack.i.h.bf16 %v532_v53  ;;  %v553_v3 = vunpack.i.l.bf16 %v552_v55  ;;  %v554_v0 = vunpack.i.h.bf16 %v552_v55 }
 0x205   :  { %408 = vmatpush.msra.mxu2 %v533_v54 }
 0x207   :  { %409 = vmatpush.msra.mxu2 %v534_v56 }
 0x208   :  { %v324_v58 = vpop.f32.mrf.mxu1 }
 0x209   :  { %330 = vmax.xlane.f32.xlu0 %v324_v58  ;;  %410 = vmatpush.msra.mxu2 %v538_v57 }
 0x20a   :  { %v557_v62 = vpop.permute.xlu2 %556 }
 0x20b   :  { %411 = vmatpush.msra.mxu2 %v539_v59  ;;  %v558_v5 = vunpack.i.l.bf16 %v557_v62  ;;  %v559_v8 = vunpack.i.h.bf16 %v557_v62 }
 0x20d   :  { %412 = vmatpush.msra.mxu2 %v543_v60 }
 0x20f   :  { %413 = vmatpush.msra.mxu2 %v544_v61 }
 0x210   :  { %v327_v1 = vpop.f32.mrf.mxu1 }
 0x211   :  { %332 = vmax.xlane.f32.xlu1 %v327_v1  ;;  %414 = vmatpush.msra.mxu2 %v548_v63 }
 0x212   :  { %v562_v6 = vpop.permute.xlu2 %561 }
 0x213   :  { %415 = vmatpush.msra.mxu2 %v549_v2  ;;  %v563_v10 = vunpack.i.l.bf16 %v562_v6  ;;  %v564_v11 = vunpack.i.h.bf16 %v562_v6 }
 0x215   :  { %416 = vmatpush.msra.mxu2 %v553_v3 }
 0x217   :  { %417 = vmatpush.msra.mxu2 %v554_v0 }
 0x219   :  { %418 = vmatpush.msra.mxu2 %v558_v5 }
 0x21b   :  { %419 = vmatpush.msra.mxu2 %v559_v8 }
 0x21d   :  { %566 = vrot.lane.b32.xlu0 %v565_v9, %s607_s2  ;;  %420 = vmatpush.msra.mxu2 %v563_v10 }
 0x21f   :  { %421 = vmatpush.msra.mxu2 %v564_v11 }
 0x27c   :  { %v331_v12 = vpop.xlane.xlu0 %330 }
 0x27d   :  { %v334_v13 = vsub.f32 %v324_v58, %v331_v12 }
 0x27f   :  { %v336_v14 = vmul.f32 1.442695, %v334_v13 }
 0x281   :  { %571 = vpow2.f32 %v336_v14 }
 0x284   :  { %v333_v29 = vpop.xlane.xlu1 %332 }
 0x285   :  { %v335_v15 = vsub.f32 %v327_v1, %v333_v29 }
 0x287   :  { %v572_v16 = vpop.eup %571  ;;  %v338_v17 = vmul.f32 1.442695, %v335_v15 }
 0x288   :  { %v342_v18 = vmul.f32 %v572_v16, %v340_v25 }
 0x289   :  { %573 = vpow2.f32 %v338_v17 }
 0x28a   :  { %447 = vmatmul.f32.vlgmr.msra.gmra.mxu3 %v342_v18 }
 0x28f   :  { %v574_v20 = vpop.eup %573  ;;  %v567_v21 = vpop.permute.xlu0 %566 }
 0x290   :  { %v568_v22 = vunpack.i.l.bf16 %v567_v21  ;;  %v343_v23 = vmul.f32 %v574_v20, %v341_v19  ;;  %v569_v24 = vunpack.i.h.bf16 %v567_v21 }
 0x292   :  { %422 = vmatpush.msra.mxu2 %v568_v22  ;;  %450 = vmatmul.f32.gmra.mxu3 %v343_v23 }
 0x294   :  { %423 = vmatpush.msra.mxu2 %v569_v24 }
 0x295   :  { %424 = vmatmul.f32.vlgmr.msra.gmra.mxu2 %v342_v18 }
 0x29d   :  { %427 = vmatmul.f32.gmra.mxu2 %v343_v23 }
 0x30d   :  { %v448_v26 = vpop.f32.mrf.mxu3 }
 0x30e   :  { %575 = vrcp.f32 %v448_v26  ;;  %v465_v32 = vand.u32 2147483648, %v448_v26  ;;  %v463_v34 = vand.u32 2147483647, %v448_v26  ;;  %vm459_vm2 = vweird.f32 %v448_v26 }
 0x310   :  { %v466_v38 = vor.u32 1.1754944e-38, %v465_v32  ;;  %vm464_vm4 = vcmp.eq.f32.partialorder %v463_v34, 8.507059e+37 }
 0x314   :  { %v576_v27 = vpop.eup %575 }
 0x315   :  { %v455_v28 = vmul.f32 %v576_v27, %v448_v26  ;;  %v451_v30 = vpop.f32.mrf.mxu3  ;;  %vm460_vm1 = vweird.f32 %v576_v27 }
 0x316   :  { %577 = vrcp.f32 %v451_v30  ;;  %vm461_vm3 = vmor %vm459_vm2, %vm460_vm1  ;;  %v480_v44 = vand.u32 2147483648, %v451_v30  ;;  %v478_v46 = vand.u32 2147483647, %v451_v30  ;;  %vm474_vm6 = vweird.f32 %v451_v30 }
 0x317   :  { %v456_v31 = vsub.f32 1.0, %v455_v28 }
 0x318   :  { %v425_v37 = vpop.f32.mrf.mxu2  ;;  %v481_v48 = vor.u32 1.1754944e-38, %v480_v44  ;;  %vm479_vm8 = vcmp.eq.f32.partialorder %v478_v46, 8.507059e+37 }
 0x319   :  { %v457_v33 = vmul.f32 %v576_v27, %v456_v31 }
 0x31b   :  { %v458_v35 = vadd.f32 %v576_v27, %v457_v33 }
 0x31c   :  { %v578_v36 = vpop.eup %577 }
 0x31d   :  { %v470_v39 = vmul.f32 %v578_v36, %v451_v30  ;;  %v462_v40 = vsel %vm461_vm3, %v576_v27, %v458_v35  ;;  %vm475_vm5 = vweird.f32 %v578_v36 }
 0x31e   :  { %v467_v41 = vsel %vm464_vm4, %v466_v38, %v462_v40  ;;  %vm476_vm7 = vmor %vm474_vm6, %vm475_vm5 }
 0x31f   :  { %v471_v42 = vsub.f32 1.0, %v470_v39  ;;  %v468_v43 = vmul.f32 %v467_v41, %v425_v37 }
 0x320   :  { %v428_v50 = vpop.f32.mrf.mxu2 }
 0x321   :  { %v472_v45 = vmul.f32 %v578_v36, %v471_v42  ;;  %484 = vst.msk [vmem:[#allocation2] sm:$0xff] %vm31_vm0, %v468_v43 }
 0x323   :  { %v473_v47 = vadd.f32 %v578_v36, %v472_v45 }
 0x325   :  { %v477_v49 = vsel %vm476_vm7, %v578_v36, %v473_v47 }
 0x326   :  { %v482_v51 = vsel %vm479_vm8, %v481_v48, %v477_v49 }
 0x327   :  { %v483_v52 = vmul.f32 %v482_v51, %v428_v50 }
 0x329   :  { %485 = vst.msk [vmem:[#allocation2 + $0x8] sm:$0xff] %vm31_vm0, %v483_v52 }
 0x32a   :  { %498 = dma.vmem_to_hbm [thread:$0]  %s491_s16, 256, %s493_s19, [#allocation3], %s609_s20, %s609_s20, %s610_s0  }
 0x32b   :  { %603 = dma.done.wait [#allocation3], 256  }
 0x32c   :  { %604 = vsyncadd [#allocation3], 4294967040 }
 0x32d   :  { %503 = vsyncpa [#allocation3], 1 }

</bundles_post_ra>
